<compile_context>
chip_gen: v5e
topology: v5e:2x2
jax: 0.10.0
libtpu: 0.0.40
codegen_flags: <defaults>
</compile_context>

<pallas_src>
import jax
import jax.numpy as jnp
from jax import lax
from jax.experimental import pallas as pl
from jax.experimental.pallas import tpu as pltpu


# ----------------------------------------------------------------------------
# Kernels.  In-kernel layout: (channels, H*W) with the spatial axis on the
# 128-lane dimension.  One grid step per batch element.
# ----------------------------------------------------------------------------
def _task_kernel(p_ref, wc_ref, bc_ref, wh_ref, bh_ref, head_ref):
    # p_ref    : (1, 9*Cin, HW) bf16  im2col patches for one batch element
    # wc_ref   : (Cf, 9*Cin)    bf16  conv weights (taps flattened, transposed)
    # bc_ref   : (Cf, 1)        f32
    # wh_ref   : (NCLS, Cf)     bf16  1x1-conv head weights (transposed)
    # bh_ref   : (NCLS, 1)      f32
    # head_ref : (1, NCLS, HW)  f32   lane-dense output
    acc = jnp.dot(wc_ref[...], p_ref[0],
                  preferred_element_type=jnp.float32)            # (Cf, HW)
    feat = jnp.maximum(acc + bc_ref[...], 0.0)                   # bias + ReLU
    scores = jnp.dot(wh_ref[...], feat.astype(jnp.bfloat16),
                     preferred_element_type=jnp.float32) + bh_ref[...]
    head_ref[0] = scores                                         # (NCLS, HW)


def _backbone_kernel(p_ref, wc_ref, bc_ref, pooled_ref, feat_ref):
    # pooled_ref : (1, Cf)      f32   backbone "x" (global average pool)
    # feat_ref   : (1, Cf, HW)  f32   fts[-1], lane-dense
    acc = jnp.dot(wc_ref[...], p_ref[0],
                  preferred_element_type=jnp.float32)            # (Cf, HW)
    feat = jnp.maximum(acc + bc_ref[...], 0.0)
    feat_ref[0] = feat
    pooled_ref[0, :] = jnp.mean(feat, axis=1)


# ----------------------------------------------------------------------------
# Wrappers
# ----------------------------------------------------------------------------
def _im2col(x_nchw):
    """(B, Cin, H, W) -> bf16 (B, 9*Cin, H*W) im2col patches (3x3, SAME)."""
    B, Cin, H, W = x_nchw.shape
    x_nhwc = jnp.transpose(x_nchw, (0, 2, 3, 1)).astype(jnp.float32)
    x_pad = jnp.pad(x_nhwc, ((0, 0), (1, 1), (1, 1), (0, 0)))
    taps = [x_pad[:, kh:kh + H, kw:kw + W, :]
            for kh in range(3) for kw in range(3)]               # 9 x (B,H,W,Cin)
    # tap-major, Cin-minor ordering -> matches w.reshape(9*Cin, Cf)
    patches = jnp.stack(taps, axis=3).reshape(B, H * W, 9 * Cin)
    return jnp.transpose(patches, (0, 2, 1)).astype(jnp.bfloat16)  # (B,9Cin,HW)


def _conv_params(params):
    w = params["w_conv"]                                         # (3,3,Cin,Cf)
    Cin, Cf = w.shape[2], w.shape[3]
    wc = jnp.transpose(w.reshape(9 * Cin, Cf)).astype(jnp.bfloat16)   # (Cf,9Cin)
    bc = params["b_conv"].reshape(Cf, 1).astype(jnp.float32)
    return wc, bc


def _task_forward(x_nchw, params, task):
    """Fused backbone+head: returns head scores in NCHW (B, NCLS, H, W)."""
    B, Cin, H, W = x_nchw.shape
    HW = H * W
    wc, bc = _conv_params(params)
    Cf = wc.shape[0]
    wh, bh = params["heads"][task]
    NCLS = wh.shape[1]
    wh_t = jnp.transpose(wh).astype(jnp.bfloat16)                # (NCLS, Cf)
    bh_c = bh.reshape(NCLS, 1).astype(jnp.float32)
    patches = _im2col(x_nchw)

    flops = 2 * B * HW * (9 * Cin * Cf + Cf * NCLS)
    bytes_accessed = (patches.size * 2 + wc.size * 2 + bc.size * 4
                      + wh_t.size * 2 + bh_c.size * 4 + B * NCLS * HW * 4)

    head = pl.pallas_call(
        _task_kernel,
        out_shape=jax.ShapeDtypeStruct((B, NCLS, HW), jnp.float32),
        grid_spec=pltpu.PrefetchScalarGridSpec(
            num_scalar_prefetch=0,
            grid=(B,),
            in_specs=[
                pl.BlockSpec((1, 9 * Cin, HW), lambda b: (b, 0, 0)),
                pl.BlockSpec((Cf, 9 * Cin), lambda b: (0, 0)),
                pl.BlockSpec((Cf, 1), lambda b: (0, 0)),
                pl.BlockSpec((NCLS, Cf), lambda b: (0, 0)),
                pl.BlockSpec((NCLS, 1), lambda b: (0, 0)),
            ],
            out_specs=pl.BlockSpec((1, NCLS, HW), lambda b: (b, 0, 0)),
        ),
        compiler_params=pltpu.CompilerParams(
            dimension_semantics=("parallel",)),
        cost_estimate=pl.CostEstimate(flops=flops, transcendentals=0,
                                      bytes_accessed=bytes_accessed),
    )(patches, wc, bc, wh_t, bh_c)
    return head.reshape(B, NCLS, H, W)


def _backbone_forward(x_nchw, params):
    """No-task branch: returns (pooled (B, Cf), fts[-1] in NCHW (B, Cf, H, W))."""
    B, Cin, H, W = x_nchw.shape
    HW = H * W
    wc, bc = _conv_params(params)
    Cf = wc.shape[0]
    patches = _im2col(x_nchw)

    flops = 2 * B * HW * 9 * Cin * Cf
    bytes_accessed = (patches.size * 2 + wc.size * 2 + bc.size * 4
                      + B * Cf * 4 + B * Cf * HW * 4)

    pooled, feat = pl.pallas_call(
        _backbone_kernel,
        out_shape=(jax.ShapeDtypeStruct((B, Cf), jnp.float32),
                   jax.ShapeDtypeStruct((B, Cf, HW), jnp.float32)),
        grid_spec=pltpu.PrefetchScalarGridSpec(
            num_scalar_prefetch=0,
            grid=(B,),
            in_specs=[
                pl.BlockSpec((1, 9 * Cin, HW), lambda b: (b, 0, 0)),
                pl.BlockSpec((Cf, 9 * Cin), lambda b: (0, 0)),
                pl.BlockSpec((Cf, 1), lambda b: (0, 0)),
            ],
            out_specs=[
                pl.BlockSpec((1, Cf), lambda b: (b, 0)),
                pl.BlockSpec((1, Cf, HW), lambda b: (b, 0, 0)),
            ],
        ),
        compiler_params=pltpu.CompilerParams(
            dimension_semantics=("parallel",)),
        cost_estimate=pl.CostEstimate(flops=flops, transcendentals=0,
                                      bytes_accessed=bytes_accessed),
    )(patches, wc, bc)
    return pooled, feat.reshape(B, Cf, H, W)


def tasknet_forward(x_nchw, params, task=None,
                    backbone_grad=True, head_grad=True):
    """Mirrors TaskNet.forward.
    backbone_grad / head_grad only toggle autograd in PyTorch; forward values
    are identical, so they are no-ops here."""
    del backbone_grad, head_grad
    if task is not None:
        return _task_forward(x_nchw, params, task)
    return _backbone_forward(x_nchw, params)


if __name__ == "__main__":
    # Small shapes: batch=2, in-channels=4, spatial=16, feature dim=32, 8 classes.
    B, CIN, H, W = 2, 4, 16, 16
    CF, NCLS = 32, 8

    key = jax.random.PRNGKey(0)
    kx, kw, kb, kwh, kbh = jax.random.split(key, 5)
    x = jax.random.normal(kx, (B, CIN, H, W), jnp.float32)

    params = {
        "w_conv": jax.random.normal(kw, (3, 3, CIN, CF), jnp.float32) * 0.1,
        "b_conv": jax.random.normal(kb, (CF,), jnp.float32) * 0.1,
        "heads": {
            "seg": (jax.random.normal(kwh, (CF, NCLS), jnp.float32) * 0.1,
                    jax.random.normal(kbh, (NCLS,), jnp.float32) * 0.1),
        },
    }

    # task branch:  head(fts[-1])  -> (B, NCLS, H, W)
    out = tasknet_forward(x, params, task="seg")
    out = jax.block_until_ready(out)
    assert out.shape == (B, NCLS, H, W)

    # no-task branch: (x, fts[-1])
    pooled, feat_last = tasknet_forward(x, params, task=None)
    jax.block_until_ready((pooled, feat_last))
    assert pooled.shape == (B, CF) and feat_last.shape == (B, CF, H, W)

    # Pure-JAX f32 reference (conv+bias+ReLU, GAP, 1x1 head).
    x_nhwc = jnp.transpose(x, (0, 2, 3, 1))
    feat_ref = jnp.maximum(
        lax.conv_general_dilated(
            x_nhwc, params["w_conv"], (1, 1), "SAME",
            dimension_numbers=("NHWC", "HWIO", "NHWC"))
        + params["b_conv"], 0.0)
    wh, bh = params["heads"]["seg"]
    out_ref = jnp.transpose(jnp.einsum("bhwc,cn->bhwn", feat_ref, wh) + bh,
                            (0, 3, 1, 2))
    pooled_ref = jnp.mean(feat_ref, axis=(1, 2))
    feat_ref_nchw = jnp.transpose(feat_ref, (0, 3, 1, 2))

    # bf16 MXU operands (f32 accumulation) -> loosened tolerance.
    TOL = 5e-2
    assert jnp.max(jnp.abs(out - out_ref)) < TOL
    assert jnp.max(jnp.abs(pooled - pooled_ref)) < TOL
    assert jnp.max(jnp.abs(feat_last - feat_ref_nchw)) < TOL

    print("KERNEL_OK")
</pallas_src>

<mosaic_0001>
module attributes {stable_mosaic.version = 11 : i64} {
  func.func @_task_kernel(%arg0: i32, %arg1: memref<1x36x256xbf16, #tpu.memory_space<vmem>>, %arg2: memref<32x36xbf16, #tpu.memory_space<vmem>>, %arg3: memref<32x1xf32, #tpu.memory_space<vmem>>, %arg4: memref<8x32xbf16, #tpu.memory_space<vmem>>, %arg5: memref<8x1xf32, #tpu.memory_space<vmem>>, %arg6: memref<1x8x256xf32, #tpu.memory_space<vmem>>) attributes {dimension_semantics = [#tpu.dimension_semantics<parallel>], iteration_bounds = array<i64: 2>, scalar_prefetch = 0 : i64, scratch_operands = 0 : i64, tpu.core_type = #tpu.core_type<tc>, window_params = [{transform_indices = @transform_0, window_bounds = array<i64: 1, 36, 256>}, {pipeline_mode = #tpu.pipeline_mode<synchronous>, transform_indices = @transform_1, window_bounds = array<i64: 32, 36>}, {pipeline_mode = #tpu.pipeline_mode<synchronous>, transform_indices = @transform_2, window_bounds = array<i64: 32, 1>}, {pipeline_mode = #tpu.pipeline_mode<synchronous>, transform_indices = @transform_3, window_bounds = array<i64: 8, 32>}, {pipeline_mode = #tpu.pipeline_mode<synchronous>, transform_indices = @transform_4, window_bounds = array<i64: 8, 1>}, {transform_indices = @transform_5, window_bounds = array<i64: 1, 8, 256>}]} {
    %c0 = arith.constant 0 : index
    %c0_0 = arith.constant 0 : index
    %0 = vector.load %arg2[%c0, %c0_0] : memref<32x36xbf16, #tpu.memory_space<vmem>>, vector<32x36xbf16>
    %c0_1 = arith.constant 0 : index
    %c0_2 = arith.constant 0 : index
    %c0_3 = arith.constant 0 : index
    %1 = vector.load %arg1[%c0_1, %c0_2, %c0_3] : memref<1x36x256xbf16, #tpu.memory_space<vmem>>, vector<1x36x256xbf16>
    %2 = vector.shape_cast %1 : vector<1x36x256xbf16> to vector<36x256xbf16>
    %cst = arith.constant dense<0.000000e+00> : vector<32x256xf32>
    %3 = tpu.matmul %0, %2, %cst {dimension_numbers = #tpu.dot_dimension_numbers<[1], [0], [0], [1], [0, 0, 1, 1], [], []>} : vector<32x36xbf16>, vector<36x256xbf16>, vector<32x256xf32> -> vector<32x256xf32>
    %c0_4 = arith.constant 0 : index
    %c0_5 = arith.constant 0 : index
    %4 = vector.load %arg3[%c0_4, %c0_5] : memref<32x1xf32, #tpu.memory_space<vmem>>, vector<32x1xf32>
    %5 = vector.broadcast %4 : vector<32x1xf32> to vector<32x256xf32>
    %6 = arith.addf %3, %5 : vector<32x256xf32>
    %cst_6 = arith.constant 0.000000e+00 : f32
    %7 = vector.broadcast %cst_6 : f32 to vector<32x256xf32>
    %8 = arith.maximumf %6, %7 : vector<32x256xf32>
    %c0_7 = arith.constant 0 : index
    %c0_8 = arith.constant 0 : index
    %9 = vector.load %arg4[%c0_7, %c0_8] : memref<8x32xbf16, #tpu.memory_space<vmem>>, vector<8x32xbf16>
    %10 = arith.truncf %8 : vector<32x256xf32> to vector<32x256xbf16>
    %cst_9 = arith.constant dense<0.000000e+00> : vector<8x256xf32>
    %11 = tpu.matmul %9, %10, %cst_9 {dimension_numbers = #tpu.dot_dimension_numbers<[1], [0], [0], [1], [0, 0, 1, 1], [], []>} : vector<8x32xbf16>, vector<32x256xbf16>, vector<8x256xf32> -> vector<8x256xf32>
    %c0_10 = arith.constant 0 : index
    %c0_11 = arith.constant 0 : index
    %12 = vector.load %arg5[%c0_10, %c0_11] : memref<8x1xf32, #tpu.memory_space<vmem>>, vector<8x1xf32>
    %13 = vector.broadcast %12 : vector<8x1xf32> to vector<8x256xf32>
    %14 = arith.addf %11, %13 : vector<8x256xf32>
    %c0_12 = arith.constant 0 : index
    %c0_13 = arith.constant 0 : index
    %c0_14 = arith.constant 0 : index
    %15 = vector.load %arg6[%c0_12, %c0_13, %c0_14] : memref<1x8x256xf32, #tpu.memory_space<vmem>>, vector<1x8x256xf32>
    %16 = vector.shape_cast %15 : vector<1x8x256xf32> to vector<8x256xf32>
    %17 = vector.shape_cast %14 : vector<8x256xf32> to vector<1x8x256xf32>
    tpu.vector_store %arg6[%c0_12, %c0_13, %c0_14], %17 {strides = array<i32>} : memref<1x8x256xf32, #tpu.memory_space<vmem>>, vector<1x8x256xf32>,
    return
  }
  func.func @transform_0(%arg0: i32) -> (i32, i32, i32) {
    %c0_i32 = arith.constant 0 : i32
    %c0_i32_0 = arith.constant 0 : i32
    %c0_i32_1 = arith.constant 0 : i32
    return %arg0, %c0_i32, %c0_i32_0 : i32, i32, i32
  }
  func.func @transform_1(%arg0: i32) -> (i32, i32) {
    %c0_i32 = arith.constant 0 : i32
    %c0_i32_0 = arith.constant 0 : i32
    %c0_i32_1 = arith.constant 0 : i32
    return %c0_i32, %c0_i32_0 : i32, i32
  }
  func.func @transform_2(%arg0: i32) -> (i32, i32) {
    %c0_i32 = arith.constant 0 : i32
    %c0_i32_0 = arith.constant 0 : i32
    %c0_i32_1 = arith.constant 0 : i32
    return %c0_i32, %c0_i32_0 : i32, i32
  }
  func.func @transform_3(%arg0: i32) -> (i32, i32) {
    %c0_i32 = arith.constant 0 : i32
    %c0_i32_0 = arith.constant 0 : i32
    %c0_i32_1 = arith.constant 0 : i32
    return %c0_i32, %c0_i32_0 : i32, i32
  }
  func.func @transform_4(%arg0: i32) -> (i32, i32) {
    %c0_i32 = arith.constant 0 : i32
    %c0_i32_0 = arith.constant 0 : i32
    %c0_i32_1 = arith.constant 0 : i32
    return %c0_i32, %c0_i32_0 : i32, i32
  }
  func.func @transform_5(%arg0: i32) -> (i32, i32, i32) {
    %c0_i32 = arith.constant 0 : i32
    %c0_i32_0 = arith.constant 0 : i32
    %c0_i32_1 = arith.constant 0 : i32
    return %arg0, %c0_i32, %c0_i32_0 : i32, i32, i32
  }
}

</mosaic_0001>

<bundles_post_ra>
// kernel: tpu_custom_call.1
= control target key start
LH: loop header
LB: loop body
LE: loop exit
PB: predicated region body
PF: predicated region fallthrough
CT: control target
= control target key end

     0   :  { %10 = vsyncpa [#allocation3], 0  ;;  %s767_s0 = inlined_call_operand.vmem [shape: bf16[2,36,256], index: 0, kind: input, shape index: {}]   ;;  %s768_s1 = inlined_call_operand.vmem [shape: bf16[32,36], index: 1, kind: input, shape index: {}]   ;;  %s769_s2 = inlined_call_operand.vmem [shape: f32[32,1], index: 2, kind: input, shape index: {}]   ;;  %s770_s3 = inlined_call_operand.vmem [shape: bf16[8,32], index: 3, kind: input, shape index: {}]   ;;  %s771_s4 = inlined_call_operand.vmem [shape: f32[8,1], index: 4, kind: input, shape index: {}]   ;;  %s772_s5 = inlined_call_operand.hbm [shape: f32[2,8,256], index: 5, kind: output, shape index: {}]  }
   0x1   :  { %12 = vsyncpa [#allocation3 + $0x1], 0  ;;  %s658_s18 = smov 0   ;;  %s660_s19 = smov 0  }
   0x2   :  { %s662_s20 = smov 0   ;;  %s664_s21 = smov 0  }
   0x3 LB: > { %s679_s22 = sadd.s32 4294967295, %s625_s21   ;;  %s471_s23 = sadd.s32 4294967294, %s625_s21   ;;  %s625_s21 = sphi %s664_s21, %s778_s21   ;;  %s621_s20 = sphi %s662_s20, %s777_s20   ;;  %s617_s19 = sphi %s660_s19, %s776_s19   ;;  %s613_s18 = sphi %s658_s18, %s775_s18  }
   0x4   : > { %s683_s24 = sadd.s32 1, %s625_s21   ;;  %s135_s25 = sadd.s32 1, %s621_s20 }
   0x5   : > { %s132_s26 = ssub.s32 %s625_s21, %s683_s24  ;;  %p145_p0 = scmp.ne.s32.totalorder %s621_s20, %s617_s19 }
   0x6   : > { %p133_p1 = scmp.eq.s32.totalorder %s132_s26, 0  ;;  %p146_p2 = scmp.eq.s32.totalorder %s679_s22, 1 }
   0x7   : > { %p151_p3 = scmp.ne.s32.totalorder %s617_s19, %s613_s18  ;;  %p152_p4 = scmp.eq.s32.totalorder %s471_s23, 1 }
   0x8   : > { %s694_s27 = scalar_select %p133_p1, %s621_s20, %s135_s25  }
   0x9   : > { %p696_p5 = por %p146_p2, %p145_p0  ;;  %p700_p6 = por %p152_p4, %p151_p3 }
   0xa   : > { %p474_p7 = scmp.ge.s32.totalorder %s625_s21, 1  ;;  %p190_p8 = scmp.lt.s32.totalorder %s625_s21, 3 }
   0xc   : > { %p191_p9 = pnand %p474_p7, %p190_p8 }
   0xd   : > { %p218_p10 = scmp.lt.s32.totalorder (!%p191_p9), %s679_s22, 1  ;;  %s215_s10 = sand.u32 (!%p191_p9), 1, %s617_s19  }
   0xe   : > { %194 = sbr.rel (%p191_p9) target bundleno = 344 (0x158), region = 40  ;;  %s475_s12 = sshll.u32 (!%p191_p9), %s215_s10, 4 }
   0xf   : > { %s217_s16 = scalar_lea.vmem (!%p191_p9), [#allocation2], %s475_s12  ;;  %s396_s25 = scalar_lea.sflag (!%p191_p9), [#allocation3], %s215_s10 }
  0x10   : > { %s409_s17 = sshll.u32 (!%p191_p9), %s217_s16, 4  ;;  %s410_s17 = int_to_ptr.vmem [resolvable:$true] %s409_s17 }
  0x13   : > { %v233_v0 = vld [vmem:[%s769_s2] sm:$0xff]  ;;  %v627_v1 = vmov 0   ;;  %s219_s7 = scalar_select %p218_p10, %s679_s22, 1  ;;  %vm299_vm0 = vcmask 1041408   ;;  %v235_v11 = vld [vmem:[%s769_s2 + $0x10] sm:$0xff]  ;;  %v234_v12 = vld [vmem:[%s769_s2 + $0x8] sm:$0xff] }
  0x14   : > { %561 = vset.pattern.permute.xlu1 %v627_v1  ;;  %560 = vset.pattern.permute.xlu0 %v627_v1  ;;  %v236_v21 = vld [vmem:[%s769_s2 + $0x18] sm:$0xff]  ;;  %v512_v24 = vld [vmem:[%s768_s1] sm:$0xff]  ;;  %vm292_vm1 = vcmask 293888   ;;  %v513_v25 = vld [vmem:[%s768_s1 + $0x8] sm:$0xff]  ;;  %vm363_vm2 = vcmask 261120  }
  0x15   : > { %239 = vperm.xlu1 %561, %v233_v0   ;;  %562 = vset.pattern.permute.xlu2 %v627_v1  ;;  %s519_s8 = smul.u32 40, %s219_s7  ;;  %v357_v28 = vld [vmem:[%s771_s4] sm:$0xff]  ;;  %s583_s7 = scalar_lea.hbm %s772_s5, 32 }
  0x16   : > { %249 = vperm.xlu0 %560, %v235_v11   ;;  %360 = vperm.xlu2 %562, %v357_v28   ;;  %v352_v59 = vld [vmem:[%s770_s3] sm:$0xf] }
  0x17   : > { %s222_s11 = scalar_lea.vmem %s767_s0, %s519_s8 }
  0x18   : > { %v232_v2 = vld [vmem:[%s222_s11 + $0x20] sm:$0x33]  ;;  %v495_v5 = vld [vmem:[%s222_s11 + $0x10] sm:$0xf]  ;;  %v517_v6 = vld [vmem:[%s222_s11 + $0x14] sm:$0xf0] }
  0x19   : > { %v280_v3 = vunpack.c.l.b16 %v232_v2  ;;  %v281_v4 = vunpack.c.h.b16 %v232_v2  ;;  %v516_v7 = vld [vmem:[%s222_s11 + $0x14] sm:$0xf]  ;;  %v497_v10 = vld [vmem:[%s222_s11 + $0x18] sm:$0xf0]  ;;  %v496_v15 = vor.u32 %v517_v6, %v495_v5  ;;  %v487_v17 = vld [vmem:[%s222_s11] sm:$0xf] }
  0x1a   : > { %v500_v16 = vor.u32 %v516_v7, %v497_v10  ;;  %v515_v18 = vld [vmem:[%s222_s11 + $0x4] sm:$0xf0]  ;;  %v514_v19 = vld [vmem:[%s222_s11 + $0x4] sm:$0xf]  ;;  %v489_v20 = vld [vmem:[%s222_s11 + $0x8] sm:$0xf0] }
  0x1b   : > { %v286_v8 = vpack.c.b16 %v280_v3, %v280_v3  ;;  %v287_v9 = vpack.c.b16 %v281_v4, %v281_v4  ;;  %v488_v22 = vor.u32 %v515_v18, %v487_v17  ;;  %v492_v23 = vor.u32 %v514_v19, %v489_v20  ;;  %s518_s11 = sshll.u32 %s679_s22, 4 }
  0x1c   : > { %s407_s15 = scalar_lea.hbm %s772_s5, %s518_s11 }
  0x1d   : > { %244 = vperm.xlu1 %561, %v234_v12   ;;  %v301_v13 = vsel %vm299_vm0, %v286_v8, 0  ;;  %v304_v14 = vsel %vm299_vm0, %v287_v9, 0  ;;  %s411_s23 = sshll.u32 %s407_s15, 4  ;;  %s412_s23 = int_to_ptr.hbm [resolvable:$true] %s411_s23 }
  0x1e   : > { %311 = vmatpush.bf16.msra.mxu0 %v301_v13  ;;  %330 = vmatpush.bf16.msra.mxu1 %v304_v14  ;;  %s577_s22 = sshra.s32 %s412_s23, 4  ;;  %s578_s22 = int_to_ptr.hbm [resolvable:$true] %s577_s22 }
  0x1f   : > { %254 = vperm.xlu0 %560, %v236_v21   ;;  %s579_s26 = scalar_lea.hbm %s578_s22, 16  ;;  %p584_p0 = scmp.lt.s32.totalorder %s578_s22, %s772_s5 }
  0x20   : > { %p580_p11 = scmp.ne.s32.totalorder %s578_s22, %s579_s26  ;;  %p585_p1 = scmp.lt.s32.totalorder %s583_s7, %s579_s26 }
  0x22   : > { %312 = vmatpush.bf16.msra.mxu0 %v496_v15  ;;  %331 = vmatpush.bf16.msra.mxu1 %v500_v16  ;;  %p581_p12 = pnand %p580_p11, %p696_p5  ;;  %p586_p2 = por %p585_p1, %p584_p0 }
  0x24   : > { %p582_p13 = pneg %p581_p12 }
  0x26   : > { %313 = vmatpush.bf16.msra.mxu0 %v488_v22  ;;  %332 = vmatpush.bf16.msra.mxu1 %v492_v23  ;;  %p587_p3 = pnand %p586_p2, %p582_p13 }
  0x29   : > { %501 = vmatmul.msk.bf16.vlgmr.msra.gmra.mxu0 %vm292_vm1, %v512_v24  ;;  %503 = vmatmul.msk.bf16.vlgmr.msra.gmra.mxu1 %vm292_vm1, %v512_v24 }
  0x39   : > { %502 = vmatmul.msk.bf16.gmra.mxu0 %vm292_vm1, %v513_v25  ;;  %504 = vmatmul.msk.bf16.gmra.mxu1 %vm292_vm1, %v513_v25 }
  0x70   : > { %v361_v60 = vpop.permute.xlu2 %360 }
  0x87   : > { %v240_v31 = vpop.permute.xlu1 %239 }
  0x88   : > { %v250_v32 = vpop.permute.xlu0 %249 }
  0x8f   : > { %v245_v35 = vpop.permute.xlu1 %244 }
  0x91   : > { %v255_v36 = vpop.permute.xlu0 %254 }
  0xa6   : > { %v315_v26 = vpop.f32.mrf.mxu0  ;;  %v334_v27 = vpop.f32.mrf.mxu1 }
  0xa7   : > { %v316_v45 = vadd.f32 %v315_v26, %v240_v31  ;;  %v335_v46 = vadd.f32 %v334_v27, %v240_v31 }
  0xa9   : > { %v344_v55 = vmax.f32 %v316_v45, 0.0  ;;  %v345_v56 = vmax.f32 %v335_v46, 0.0 }
  0xae   : > { %v317_v29 = vpop.f32.mrf.mxu0  ;;  %v336_v30 = vpop.f32.mrf.mxu1 }
  0xaf   : > { %v318_v41 = vadd.f32 %v317_v29, %v245_v35  ;;  %v337_v42 = vadd.f32 %v336_v30, %v245_v35 }
  0xb1   : > { %v346_v51 = vmax.f32 %v318_v41, 0.0  ;;  %v347_v52 = vmax.f32 %v337_v42, 0.0 }
  0xb3   : > { %v353_v57 = vpack.c.bf16 %v346_v51, %v344_v55  ;;  %v354_v58 = vpack.c.bf16 %v347_v52, %v345_v56 }
  0xb6   : > { %v320_v33 = vpop.f32.mrf.mxu0  ;;  %v339_v34 = vpop.f32.mrf.mxu1 }
  0xb7   : > { %v321_v37 = vadd.f32 %v320_v33, %v250_v32  ;;  %v340_v38 = vadd.f32 %v339_v34, %v250_v32 }
  0xb9   : > { %v348_v47 = vmax.f32 %v321_v37, 0.0  ;;  %v349_v48 = vmax.f32 %v340_v38, 0.0 }
  0xbe   : > { %v322_v39 = vpop.f32.mrf.mxu0  ;;  %v341_v40 = vpop.f32.mrf.mxu1 }
  0xbf   : > { %v323_v43 = vadd.f32 %v322_v39, %v255_v36  ;;  %v342_v44 = vadd.f32 %v341_v40, %v255_v36 }
  0xc1   : > { %v350_v49 = vmax.f32 %v323_v43, 0.0  ;;  %v351_v50 = vmax.f32 %v342_v44, 0.0 }
  0xc3   : > { %v355_v53 = vpack.c.bf16 %v350_v49, %v348_v47  ;;  %v356_v54 = vpack.c.bf16 %v351_v50, %v349_v48 }
  0xc5   : > { %373 = vmatpush.bf16.msra.mxu2 %v355_v53  ;;  %386 = vmatpush.bf16.msra.mxu3 %v356_v54 }
  0xc9   : > { %374 = vmatpush.bf16.msra.mxu2 %v353_v57  ;;  %387 = vmatpush.bf16.msra.mxu3 %v354_v58 }
  0xcc   : > { %505 = vmatmul.msk.bf16.vlgmr.msra.gmra.mxu2 %vm363_vm2, %v352_v59  ;;  %506 = vmatmul.msk.bf16.vlgmr.msra.gmra.mxu3 %vm363_vm2, %v352_v59 }
 0x14f   : > { %v376_v61 = vpop.f32.mrf.mxu2  ;;  %v389_v62 = vpop.f32.mrf.mxu3 }
 0x150   : > { %v377_v63 = vadd.f32 %v376_v61, %v361_v60  ;;  %v390_v0 = vadd.f32 %v389_v62, %v361_v60 }
 0x152   : > { %393 = vst [vmem:[%s217_s16] sm:$0xff] %v377_v63 }
 0x153   : > { %394 = vst [vmem:[%s217_s16 + $0x8] sm:$0xff] %v390_v0 }
 0x154   : > { %590 = shalt.err (!%p587_p3)
}
 0x155   : > { %520 = dma.vmem_to_hbm [thread:$0]  (%p696_p5), %s410_s17, 256, %s412_s23, %s396_s25  }
 0x157   : > { %v378_v1 = vpop.f32.mrf.mxu2  ;;  %v391_v2 = vpop.f32.mrf.mxu3 }
 0x158 PF: > { %p526_p4 = scmp.ge.s32.totalorder %s625_s21, 2  ;;  %s423_s10 = sand.u32 1, %s613_s18  }
 0x159   : > { %s424_s11 = scalar_lea.sflag [#allocation3], %s423_s10 }
 0x15a   : > { %p523_p7 = pnand %p526_p4, %p700_p6 }
 0x15c   : > { %p524_p8 = pneg %p523_p7 }
 0x15e   : > { %608 = dma.done.wait (%p524_p8), %s424_s11, 256  }
 0x15f   : > { %610 = vsyncadd (%p524_p8), %s424_s11, 4294967040  ;;  %p15_p5 = scmp.ge.s32.totalorder %s683_s24, 4   ;;  %s775_s18 = smov %s617_s19 }
 0x160   : > { %s776_s19 = smov %s621_s20  ;;  %s777_s20 = smov %s694_s27 }
 0x161   : > { %s778_s21 = smov %s683_s24  ;;  %17 = sbr.rel (!%p15_p5) target bundleno = 3 (0x3), region = 75 }
 0x166   :  { %430 = vsyncpa [#allocation3], 1 }
 0x167   :  { %432 = vsyncpa [#allocation3 + $0x1], 1 }

</bundles_post_ra>
